<compile_context>
chip_gen: v7x
topology: tpu7x:2x2x1
jax: 0.10.0
libtpu: 0.0.40
codegen_flags: <defaults>
</compile_context>

<pallas_src>
import jax
import jax.numpy as jnp
from jax import lax
from jax.experimental import pallas as pl
from jax.experimental.pallas import tpu as pltpu

VTH = 0.5     # firing threshold (also the Vth factor inside tdBatchNorm)
TAU = 0.5     # membrane leak
ALPHA = 1.0   # tdBatchNorm alpha
EPS = 1e-5    # BN epsilon


def _round_up(x, m):
    return (x + m - 1) // m * m


# ---------------------------------------------------------------------------
# Pass 1: conv (2x2/stride-2 as matmul) + per-channel sum / sum-of-squares.
# Output blocks are resident across the time axis and accumulated in place.
# ---------------------------------------------------------------------------
def _stats_kernel(w_ref, x_ref, sum_ref, ssq_ref):
    t = pl.program_id(1)

    @pl.when(t == 0)
    def _():
        sum_ref[...] = jnp.zeros_like(sum_ref)
        ssq_ref[...] = jnp.zeros_like(ssq_ref)

    # (Cout, K) @ (K, tile_S) -> (Cout, tile_S), f32 accumulation on the MXU.
    conv = jnp.dot(w_ref[...], x_ref[0], preferred_element_type=jnp.float32)
    sum_ref[0] += jnp.sum(conv, axis=1, keepdims=True)
    ssq_ref[0] += jnp.sum(conv * conv, axis=1, keepdims=True)


# ---------------------------------------------------------------------------
# Pass 2: conv recompute + folded-BN (scale/shift) + LIF recurrence in time.
# LIF state is carried in VMEM scratch across the sequential time grid axis.
# ---------------------------------------------------------------------------
def _lif_kernel(w_ref, scale_ref, shift_ref, x_ref, o_ref, u_ref, op_ref):
    t = pl.program_id(1)

    @pl.when(t == 0)
    def _():
        u_ref[...] = jnp.zeros_like(u_ref)    # membrane potential
        op_ref[...] = jnp.zeros_like(op_ref)  # previous-step spikes (zeros at t=0)

    conv = jnp.dot(w_ref[...], x_ref[0], preferred_element_type=jnp.float32)
    y = conv * scale_ref[...] + shift_ref[...]          # folded tdBatchNorm
    u = TAU * u_ref[...] * (1.0 - op_ref[...]) + y      # LIF membrane update
    o = (u > VTH).astype(jnp.float32)
    u_ref[...] = u
    op_ref[...] = o
    o_ref[0] = o


def downsampling_layer(x, weight, bias, gamma, beta, *, max_tile_s=512):
    """x: (N, C_in, H, W, T) float32 -> spikes (N, C_out, H//2, W//2, T) float32."""
    N, Cin, H, W, T = x.shape
    Cout = weight.shape[0]
    H2, W2 = H // 2, W // 2
    S = N * H2 * W2
    K = Cin * 4

    # Lane-dense conv-as-matmul layout: (T, K, S), K ordered (cin, ky, kx),
    # S ordered (n, h2, w2). A pure permutation of x, materialized once (bf16).
    xc = x.reshape(N, Cin, H2, 2, W2, 2, T)
    xc = jnp.transpose(xc, (6, 1, 3, 5, 0, 2, 4))        # (T, Cin, 2, 2, N, H2, W2)
    xc = xc.reshape(T, K, S).astype(jnp.bfloat16)

    # Pad spatial (lane dim) to a multiple of 128 and Cout (sublane dim) to x8.
    tile_s = max_tile_s if S >= max_tile_s else _round_up(S, 128)
    S_pad = _round_up(S, tile_s)
    Cp = _round_up(Cout, 8)
    if S_pad != S:
        xc = jnp.pad(xc, ((0, 0), (0, 0), (0, S_pad - S)))
    num_tiles = S_pad // tile_s

    wk = weight.reshape(Cout, K)
    if Cp != Cout:
        wk = jnp.pad(wk, ((0, Cp - Cout), (0, 0)))
    wk = wk.astype(jnp.bfloat16)
    # Conv bias intentionally unused: tdBatchNorm's mean subtraction cancels a
    # per-channel bias exactly (mean/var are shift-invariant).
    del bias

    sems = ("parallel", "arbitrary")  # spatial tiles independent; time sequential

    # ---- pass 1: per-channel sum / sumsq of the conv output ---------------
    sums, ssqs = pl.pallas_call(
        _stats_kernel,
        out_shape=(jax.ShapeDtypeStruct((num_tiles, Cp, 1), jnp.float32),
                   jax.ShapeDtypeStruct((num_tiles, Cp, 1), jnp.float32)),
        grid_spec=pltpu.PrefetchScalarGridSpec(
            num_scalar_prefetch=0,
            grid=(num_tiles, T),
            in_specs=[pl.BlockSpec((Cp, K), lambda s, t: (0, 0)),
                      pl.BlockSpec((1, K, tile_s), lambda s, t: (t, 0, s))],
            out_specs=[pl.BlockSpec((1, Cp, 1), lambda s, t: (s, 0, 0)),
                       pl.BlockSpec((1, Cp, 1), lambda s, t: (s, 0, 0))]),
        compiler_params=pltpu.CompilerParams(dimension_semantics=sems),
    )(wk, xc)

    # Fold BN into a per-channel scale/shift (tiny; plain XLA between passes).
    count = float(T * S)                    # true count: padded lanes give exact zeros
    mean = jnp.sum(sums, axis=0) / count    # (Cp, 1)
    var = jnp.maximum(jnp.sum(ssqs, axis=0) / count - mean * mean, 0.0)
    # TODO(synk): uncentered E[x^2]-E[x]^2 variance; switch to a centered second
    # pass if conv means become large relative to their spread.
    inv_std = lax.rsqrt(var + EPS)
    g = jnp.pad(gamma.astype(jnp.float32), (0, Cp - Cout), constant_values=1.0)[:, None]
    b = jnp.pad(beta.astype(jnp.float32), (0, Cp - Cout))[:, None]
    scale = ALPHA * VTH * inv_std * g       # (Cp, 1)
    shift = b - scale * mean                # (Cp, 1)

    # ---- pass 2: conv + BN apply + LIF spikes ------------------------------
    out = pl.pallas_call(
        _lif_kernel,
        out_shape=jax.ShapeDtypeStruct((T, Cp, S_pad), jnp.float32),
        grid_spec=pltpu.PrefetchScalarGridSpec(
            num_scalar_prefetch=0,
            grid=(num_tiles, T),
            in_specs=[pl.BlockSpec((Cp, K), lambda s, t: (0, 0)),
                      pl.BlockSpec((Cp, 1), lambda s, t: (0, 0)),
                      pl.BlockSpec((Cp, 1), lambda s, t: (0, 0)),
                      pl.BlockSpec((1, K, tile_s), lambda s, t: (t, 0, s))],
            out_specs=pl.BlockSpec((1, Cp, tile_s), lambda s, t: (t, 0, s)),
            scratch_shapes=[pltpu.VMEM((Cp, tile_s), jnp.float32),   # membrane u
                            pltpu.VMEM((Cp, tile_s), jnp.float32)],  # previous spikes
        ),
        compiler_params=pltpu.CompilerParams(dimension_semantics=sems),
    )(wk, scale, shift, xc)

    out = out[:, :Cout, :S]                          # drop channel/spatial padding
    out = out.reshape(T, Cout, N, H2, W2)
    out = jnp.transpose(out, (2, 1, 3, 4, 0))        # (N, Cout, H2, W2, T)
    return out


if __name__ == "__main__":
    # Small shapes consistent with the module's 5-D (N, C, H, W, T) input.
    N, Cin, Cout, H, W, T = 2, 4, 8, 16, 16, 8

    key = jax.random.PRNGKey(0)
    kx, kw, kb = jax.random.split(key, 3)

    x = jax.random.normal(kx, (N, Cin, H, W, T), dtype=jnp.float32)

    # Deterministic parameter init (Conv2d-like fan-in scaling; BN gamma=1, beta=0).
    fan_in = Cin * 2 * 2
    bound = 1.0 / (fan_in ** 0.5)
    weight = jax.random.uniform(kw, (Cout, Cin, 2, 2), jnp.float32, -bound, bound)
    bias = jax.random.uniform(kb, (Cout,), jnp.float32, -bound, bound)
    gamma = jnp.ones((Cout,), jnp.float32)
    beta = jnp.zeros((Cout,), jnp.float32)

    y = jax.jit(downsampling_layer)(x, weight, bias, gamma, beta)
    y = jax.block_until_ready(y)

    assert y.shape == (N, Cout, H // 2, W // 2, T), y.shape
    assert y.dtype == jnp.float32
    print("KERNEL_OK")
</pallas_src>

<mosaic_0001>
module attributes {stable_mosaic.version = 11 : i64} {
  func.func @_stats_kernel(%arg0: i32, %arg1: i32, %arg2: memref<8x16xbf16, #tpu.memory_space<vmem>>, %arg3: memref<1x16x128xbf16, #tpu.memory_space<vmem>>, %arg4: memref<1x8x1xf32, #tpu.memory_space<vmem>>, %arg5: memref<1x8x1xf32, #tpu.memory_space<vmem>>) attributes {dimension_semantics = [#tpu.dimension_semantics<parallel>, #tpu.dimension_semantics<arbitrary>], iteration_bounds = array<i64: 1, 8>, scalar_prefetch = 0 : i64, scratch_operands = 0 : i64, tpu.core_type = #tpu.core_type<tc>, window_params = [{pipeline_mode = #tpu.pipeline_mode<synchronous>, transform_indices = @transform_0, window_bounds = array<i64: 8, 16>}, {transform_indices = @transform_1, window_bounds = array<i64: 1, 16, 128>}, {transform_indices = @transform_2, window_bounds = array<i64: 1, 8, 1>}, {transform_indices = @transform_3, window_bounds = array<i64: 1, 8, 1>}]} {
    %c0_i32 = arith.constant 0 : i32
    %0 = arith.cmpi eq, %arg1, %c0_i32 : i32
    %1 = arith.extui %0 : i1 to i32
    %c0_i32_0 = arith.constant 0 : i32
    %2 = arith.cmpi ne, %1, %c0_i32_0 : i32
    scf.if %2 {
      %cst_19 = arith.constant 0.000000e+00 : f32
      %24 = vector.broadcast %cst_19 : f32 to vector<1x8x1xf32>
      %c0_20 = arith.constant 0 : index
      %c0_21 = arith.constant 0 : index
      %c0_22 = arith.constant 0 : index
      %25 = vector.load %arg4[%c0_20, %c0_21, %c0_22] : memref<1x8x1xf32, #tpu.memory_space<vmem>>, vector<1x8x1xf32>
      tpu.vector_store %arg4[%c0_20, %c0_21, %c0_22], %24 {strides = array<i32>} : memref<1x8x1xf32, #tpu.memory_space<vmem>>, vector<1x8x1xf32>,
      %cst_23 = arith.constant 0.000000e+00 : f32
      %26 = vector.broadcast %cst_23 : f32 to vector<1x8x1xf32>
      %c0_24 = arith.constant 0 : index
      %c0_25 = arith.constant 0 : index
      %c0_26 = arith.constant 0 : index
      %27 = vector.load %arg5[%c0_24, %c0_25, %c0_26] : memref<1x8x1xf32, #tpu.memory_space<vmem>>, vector<1x8x1xf32>
      tpu.vector_store %arg5[%c0_24, %c0_25, %c0_26], %26 {strides = array<i32>} : memref<1x8x1xf32, #tpu.memory_space<vmem>>, vector<1x8x1xf32>,
    } else {
    }
    %c0 = arith.constant 0 : index
    %c0_1 = arith.constant 0 : index
    %3 = vector.load %arg2[%c0, %c0_1] : memref<8x16xbf16, #tpu.memory_space<vmem>>, vector<8x16xbf16>
    %c0_2 = arith.constant 0 : index
    %c0_3 = arith.constant 0 : index
    %c0_4 = arith.constant 0 : index
    %4 = vector.load %arg3[%c0_2, %c0_3, %c0_4] : memref<1x16x128xbf16, #tpu.memory_space<vmem>>, vector<1x16x128xbf16>
    %5 = vector.shape_cast %4 : vector<1x16x128xbf16> to vector<16x128xbf16>
    %cst = arith.constant dense<0.000000e+00> : vector<8x128xf32>
    %6 = tpu.matmul %3, %5, %cst {dimension_numbers = #tpu.dot_dimension_numbers<[1], [0], [0], [1], [0, 0, 1, 1], [], []>} : vector<8x16xbf16>, vector<16x128xbf16>, vector<8x128xf32> -> vector<8x128xf32>
    %c0_5 = arith.constant 0 : index
    %c0_6 = arith.constant 0 : index
    %c0_7 = arith.constant 0 : index
    %7 = vector.load %arg4[%c0_5, %c0_6, %c0_7] : memref<1x8x1xf32, #tpu.memory_space<vmem>>, vector<1x8x1xf32>
    %8 = vector.shape_cast %7 : vector<1x8x1xf32> to vector<8x1xf32>
    %cst_8 = arith.constant dense<0.000000e+00> : vector<8xf32>
    %9 = vector.multi_reduction <add>, %6, %cst_8 [1] : vector<8x128xf32> to vector<8xf32>
    %10 = vector.shape_cast %9 : vector<8xf32> to vector<8x1xf32>
    %11 = arith.addf %8, %10 : vector<8x1xf32>
    %c0_9 = arith.constant 0 : index
    %c0_10 = arith.constant 0 : index
    %c0_11 = arith.constant 0 : index
    %12 = vector.load %arg4[%c0_9, %c0_10, %c0_11] : memref<1x8x1xf32, #tpu.memory_space<vmem>>, vector<1x8x1xf32>
    %13 = vector.shape_cast %12 : vector<1x8x1xf32> to vector<8x1xf32>
    %14 = vector.shape_cast %11 : vector<8x1xf32> to vector<1x8x1xf32>
    tpu.vector_store %arg4[%c0_9, %c0_10, %c0_11], %14 {strides = array<i32>} : memref<1x8x1xf32, #tpu.memory_space<vmem>>, vector<1x8x1xf32>,
    %c0_12 = arith.constant 0 : index
    %c0_13 = arith.constant 0 : index
    %c0_14 = arith.constant 0 : index
    %15 = vector.load %arg5[%c0_12, %c0_13, %c0_14] : memref<1x8x1xf32, #tpu.memory_space<vmem>>, vector<1x8x1xf32>
    %16 = vector.shape_cast %15 : vector<1x8x1xf32> to vector<8x1xf32>
    %17 = arith.mulf %6, %6 : vector<8x128xf32>
    %cst_15 = arith.constant dense<0.000000e+00> : vector<8xf32>
    %18 = vector.multi_reduction <add>, %17, %cst_15 [1] : vector<8x128xf32> to vector<8xf32>
    %19 = vector.shape_cast %18 : vector<8xf32> to vector<8x1xf32>
    %20 = arith.addf %16, %19 : vector<8x1xf32>
    %c0_16 = arith.constant 0 : index
    %c0_17 = arith.constant 0 : index
    %c0_18 = arith.constant 0 : index
    %21 = vector.load %arg5[%c0_16, %c0_17, %c0_18] : memref<1x8x1xf32, #tpu.memory_space<vmem>>, vector<1x8x1xf32>
    %22 = vector.shape_cast %21 : vector<1x8x1xf32> to vector<8x1xf32>
    %23 = vector.shape_cast %20 : vector<8x1xf32> to vector<1x8x1xf32>
    tpu.vector_store %arg5[%c0_16, %c0_17, %c0_18], %23 {strides = array<i32>} : memref<1x8x1xf32, #tpu.memory_space<vmem>>, vector<1x8x1xf32>,
    return
  }
  func.func @transform_0(%arg0: i32, %arg1: i32) -> (i32, i32) {
    %c0_i32 = arith.constant 0 : i32
    %c0_i32_0 = arith.constant 0 : i32
    %c0_i32_1 = arith.constant 0 : i32
    return %c0_i32, %c0_i32_0 : i32, i32
  }
  func.func @transform_1(%arg0: i32, %arg1: i32) -> (i32, i32, i32) {
    %c0_i32 = arith.constant 0 : i32
    %c0_i32_0 = arith.constant 0 : i32
    return %arg1, %c0_i32, %arg0 : i32, i32, i32
  }
  func.func @transform_2(%arg0: i32, %arg1: i32) -> (i32, i32, i32) {
    %c0_i32 = arith.constant 0 : i32
    %c0_i32_0 = arith.constant 0 : i32
    %c0_i32_1 = arith.constant 0 : i32
    return %arg0, %c0_i32, %c0_i32_0 : i32, i32, i32
  }
  func.func @transform_3(%arg0: i32, %arg1: i32) -> (i32, i32, i32) {
    %c0_i32 = arith.constant 0 : i32
    %c0_i32_0 = arith.constant 0 : i32
    %c0_i32_1 = arith.constant 0 : i32
    return %arg0, %c0_i32, %c0_i32_0 : i32, i32, i32
  }
}

module attributes {stable_mosaic.version = 11 : i64} {
  func.func @_lif_kernel(%arg0: i32, %arg1: i32, %arg2: memref<8x16xbf16, #tpu.memory_space<vmem>>, %arg3: memref<8x1xf32, #tpu.memory_space<vmem>>, %arg4: memref<8x1xf32, #tpu.memory_space<vmem>>, %arg5: memref<1x16x128xbf16, #tpu.memory_space<vmem>>, %arg6: memref<1x8x128xf32, #tpu.memory_space<vmem>>, %arg7: memref<8x128xf32, #tpu.memory_space<vmem>>, %arg8: memref<8x128xf32, #tpu.memory_space<vmem>>) attributes {dimension_semantics = [#tpu.dimension_semantics<parallel>, #tpu.dimension_semantics<arbitrary>], iteration_bounds = array<i64: 1, 8>, scalar_prefetch = 0 : i64, scratch_operands = 2 : i64, tpu.core_type = #tpu.core_type<tc>, window_params = [{pipeline_mode = #tpu.pipeline_mode<synchronous>, transform_indices = @transform_0, window_bounds = array<i64: 8, 16>}, {pipeline_mode = #tpu.pipeline_mode<synchronous>, transform_indices = @transform_1, window_bounds = array<i64: 8, 1>}, {pipeline_mode = #tpu.pipeline_mode<synchronous>, transform_indices = @transform_2, window_bounds = array<i64: 8, 1>}, {transform_indices = @transform_3, window_bounds = array<i64: 1, 16, 128>}, {transform_indices = @transform_4, window_bounds = array<i64: 1, 8, 128>}]} {
    %c0_i32 = arith.constant 0 : i32
    %0 = arith.cmpi eq, %arg1, %c0_i32 : i32
    %1 = arith.extui %0 : i1 to i32
    %c0_i32_0 = arith.constant 0 : i32
    %2 = arith.cmpi ne, %1, %c0_i32_0 : i32
    scf.if %2 {
      %cst_23 = arith.constant 0.000000e+00 : f32
      %30 = vector.broadcast %cst_23 : f32 to vector<8x128xf32>
      %c0_24 = arith.constant 0 : index
      %c0_25 = arith.constant 0 : index
      %31 = vector.load %arg7[%c0_24, %c0_25] : memref<8x128xf32, #tpu.memory_space<vmem>>, vector<8x128xf32>
      tpu.vector_store %arg7[%c0_24, %c0_25], %30 {strides = array<i32>} : memref<8x128xf32, #tpu.memory_space<vmem>>, vector<8x128xf32>,
      %cst_26 = arith.constant 0.000000e+00 : f32
      %32 = vector.broadcast %cst_26 : f32 to vector<8x128xf32>
      %c0_27 = arith.constant 0 : index
      %c0_28 = arith.constant 0 : index
      %33 = vector.load %arg8[%c0_27, %c0_28] : memref<8x128xf32, #tpu.memory_space<vmem>>, vector<8x128xf32>
      tpu.vector_store %arg8[%c0_27, %c0_28], %32 {strides = array<i32>} : memref<8x128xf32, #tpu.memory_space<vmem>>, vector<8x128xf32>,
    } else {
    }
    %c0 = arith.constant 0 : index
    %c0_1 = arith.constant 0 : index
    %3 = vector.load %arg2[%c0, %c0_1] : memref<8x16xbf16, #tpu.memory_space<vmem>>, vector<8x16xbf16>
    %c0_2 = arith.constant 0 : index
    %c0_3 = arith.constant 0 : index
    %c0_4 = arith.constant 0 : index
    %4 = vector.load %arg5[%c0_2, %c0_3, %c0_4] : memref<1x16x128xbf16, #tpu.memory_space<vmem>>, vector<1x16x128xbf16>
    %5 = vector.shape_cast %4 : vector<1x16x128xbf16> to vector<16x128xbf16>
    %cst = arith.constant dense<0.000000e+00> : vector<8x128xf32>
    %6 = tpu.matmul %3, %5, %cst {dimension_numbers = #tpu.dot_dimension_numbers<[1], [0], [0], [1], [0, 0, 1, 1], [], []>} : vector<8x16xbf16>, vector<16x128xbf16>, vector<8x128xf32> -> vector<8x128xf32>
    %c0_5 = arith.constant 0 : index
    %c0_6 = arith.constant 0 : index
    %7 = vector.load %arg3[%c0_5, %c0_6] : memref<8x1xf32, #tpu.memory_space<vmem>>, vector<8x1xf32>
    %8 = vector.broadcast %7 : vector<8x1xf32> to vector<8x128xf32>
    %9 = arith.mulf %6, %8 : vector<8x128xf32>
    %c0_7 = arith.constant 0 : index
    %c0_8 = arith.constant 0 : index
    %10 = vector.load %arg4[%c0_7, %c0_8] : memref<8x1xf32, #tpu.memory_space<vmem>>, vector<8x1xf32>
    %11 = vector.broadcast %10 : vector<8x1xf32> to vector<8x128xf32>
    %12 = arith.addf %9, %11 : vector<8x128xf32>
    %c0_9 = arith.constant 0 : index
    %c0_10 = arith.constant 0 : index
    %13 = vector.load %arg7[%c0_9, %c0_10] : memref<8x128xf32, #tpu.memory_space<vmem>>, vector<8x128xf32>
    %cst_11 = arith.constant 5.000000e-01 : f32
    %14 = vector.broadcast %cst_11 : f32 to vector<8x128xf32>
    %15 = arith.mulf %14, %13 : vector<8x128xf32>
    %c0_12 = arith.constant 0 : index
    %c0_13 = arith.constant 0 : index
    %16 = vector.load %arg8[%c0_12, %c0_13] : memref<8x128xf32, #tpu.memory_space<vmem>>, vector<8x128xf32>
    %cst_14 = arith.constant 1.000000e+00 : f32
    %17 = vector.broadcast %cst_14 : f32 to vector<8x128xf32>
    %18 = arith.subf %17, %16 : vector<8x128xf32>
    %19 = arith.mulf %15, %18 : vector<8x128xf32>
    %20 = arith.addf %19, %12 : vector<8x128xf32>
    %cst_15 = arith.constant 5.000000e-01 : f32
    %21 = vector.broadcast %cst_15 : f32 to vector<8x128xf32>
    %22 = arith.cmpf ogt, %20, %21 : vector<8x128xf32>
    %23 = arith.extui %22 : vector<8x128xi1> to vector<8x128xi32>
    %24 = arith.sitofp %23 : vector<8x128xi32> to vector<8x128xf32>
    %c0_16 = arith.constant 0 : index
    %c0_17 = arith.constant 0 : index
    %25 = vector.load %arg7[%c0_16, %c0_17] : memref<8x128xf32, #tpu.memory_space<vmem>>, vector<8x128xf32>
    tpu.vector_store %arg7[%c0_16, %c0_17], %20 {strides = array<i32>} : memref<8x128xf32, #tpu.memory_space<vmem>>, vector<8x128xf32>,
    %c0_18 = arith.constant 0 : index
    %c0_19 = arith.constant 0 : index
    %26 = vector.load %arg8[%c0_18, %c0_19] : memref<8x128xf32, #tpu.memory_space<vmem>>, vector<8x128xf32>
    tpu.vector_store %arg8[%c0_18, %c0_19], %24 {strides = array<i32>} : memref<8x128xf32, #tpu.memory_space<vmem>>, vector<8x128xf32>,
    %c0_20 = arith.constant 0 : index
    %c0_21 = arith.constant 0 : index
    %c0_22 = arith.constant 0 : index
    %27 = vector.load %arg6[%c0_20, %c0_21, %c0_22] : memref<1x8x128xf32, #tpu.memory_space<vmem>>, vector<1x8x128xf32>
    %28 = vector.shape_cast %27 : vector<1x8x128xf32> to vector<8x128xf32>
    %29 = vector.shape_cast %24 : vector<8x128xf32> to vector<1x8x128xf32>
    tpu.vector_store %arg6[%c0_20, %c0_21, %c0_22], %29 {strides = array<i32>} : memref<1x8x128xf32, #tpu.memory_space<vmem>>, vector<1x8x128xf32>,
    return
  }
  func.func @transform_0(%arg0: i32, %arg1: i32) -> (i32, i32) {
    %c0_i32 = arith.constant 0 : i32
    %c0_i32_0 = arith.constant 0 : i32
    %c0_i32_1 = arith.constant 0 : i32
    return %c0_i32, %c0_i32_0 : i32, i32
  }
  func.func @transform_1(%arg0: i32, %arg1: i32) -> (i32, i32) {
    %c0_i32 = arith.constant 0 : i32
    %c0_i32_0 = arith.constant 0 : i32
    %c0_i32_1 = arith.constant 0 : i32
    return %c0_i32, %c0_i32_0 : i32, i32
  }
  func.func @transform_2(%arg0: i32, %arg1: i32) -> (i32, i32) {
    %c0_i32 = arith.constant 0 : i32
    %c0_i32_0 = arith.constant 0 : i32
    %c0_i32_1 = arith.constant 0 : i32
    return %c0_i32, %c0_i32_0 : i32, i32
  }
  func.func @transform_3(%arg0: i32, %arg1: i32) -> (i32, i32, i32) {
    %c0_i32 = arith.constant 0 : i32
    %c0_i32_0 = arith.constant 0 : i32
    return %arg1, %c0_i32, %arg0 : i32, i32, i32
  }
  func.func @transform_4(%arg0: i32, %arg1: i32) -> (i32, i32, i32) {
    %c0_i32 = arith.constant 0 : i32
    %c0_i32_0 = arith.constant 0 : i32
    return %arg1, %c0_i32, %arg0 : i32, i32, i32
  }
}

</mosaic_0001>

<bundles_post_ra>
// kernel: downsampling_layer.2
= control target key start
LH: loop header
LB: loop body
LE: loop exit
PB: predicated region body
PF: predicated region fallthrough
CT: control target
= control target key end

     0   :  { %s466_s12 = smov 0   ;;  %s468_s13 = smov 0   ;;  %s517_s0 = inlined_call_operand.vmem [shape: bf16[8,16], index: 0, kind: input, shape index: {}]   ;;  %s518_s1 = inlined_call_operand.vmem [shape: bf16[8,16,128], index: 1, kind: input, shape index: {}]   ;;  %s519_s2 = inlined_call_operand.vmem [shape: f32[1,8,1], index: 2, kind: output, shape index: {0}]   ;;  %s520_s3 = inlined_call_operand.vmem [shape: f32[1,8,1], index: 3, kind: output, shape index: {1}]  }
   0x1   :  { %s470_s14 = smov 0  }
   0x2 LB: > { %s23_s15 = sadd.s32 1, %s437_s13  ;;  %p372_p0 = scmp.ge.s32.totalorder %s441_s14, 1  ;;  %s441_s14 = sphi %s470_s14, %s14_s14   ;;  %s437_s13 = sphi %s468_s13, %s522_s13   ;;  %s433_s12 = sphi %s466_s12, %s521_s12  }
   0x3   : > { %p24_p1 = scmp.ge.s32.totalorder %s23_s15, 8  ;;  %p157_p2 = scmp.lt.s32.totalorder %s441_s14, 9 }
   0x5   : > { %s524_s15 = smov (%p24_p1, %s23_s15), 0  ;;  %p158_p3 = pnand %p372_p0, %p157_p2 }
   0x6   : > { %p187_p4 = scmp.lt.s32.totalorder (!%p158_p3), %s433_s12, 7  ;;  %p375_p5 = scmp.ne.s32.totalorder (!%p158_p3), %s433_s12, 0 }
   0x7   : > { %161 = sbr.rel (%p158_p3) target bundleno = 388 (0x184), region = 28 }
   0xe   : > { %s188_s16 = scalar_select %p187_p4, %s433_s12, 7 }
   0xf   : > { %207 = sbr.rel (%p375_p5) target bundleno = 22 (0x16), region = 32  ;;  %vm208_vm0 = vcmask (!%p375_p5), 7168   ;;  %v443_v0 = vmov (!%p375_p5), 0.0  }
  0x10   : > { %s382_s17 = sshll.u32 %s188_s16, 3  ;;  %209 = vst.msk [vmem:[%s519_s2] sm:$0xff] (!%p375_p5), %vm208_vm0, %v443_v0  ;;  %210 = vst.msk [vmem:[%s520_s3] sm:$0xff] (!%p375_p5), %vm208_vm0, %v443_v0 }
  0x11   : > { %s194_s20 = scalar_lea.vmem %s518_s1, %s382_s17 }
  0x16 PF: > { %v418_v1 = vld [vmem:[%s194_s20] sm:$0xff]   ;;  %v444_v2 = vmov 0.0   ;;  %vm445_vm1 = vmmov 0   ;;  %vm220_vm2 = vcmask 130048   ;;  %vm268_vm3 = vcmask 7168  }
  0x17   : > { %385 = vmatprep.subr.bf16.mxu0 %v444_v2  ;;  %387 = vmatprep.mubr.msk.bf16.mxu0 %vm445_vm1, %v444_v2  ;;  %v211_v3 = vld [vmem:[%s517_s0] sm:$0xf] }
  0x18   : > { %386 = vmatpush3.bf16.msra.mxu0 %v418_v1  ;;  %v264_v9 = vld [vmem:[%s519_s2] sm:$0xff] }
  0x19   : > { %v270_v12 = vld [vmem:[%s520_s3] sm:$0xff] }
  0x1b   : > { %388 = vmatmul.mubr.msk.bf16.vlgmr.msra.gmra.mrb[0].mxu0 %vm220_vm2, %v211_v3 }
  0xee   : > { %v258_v4 = vpop.f32.mrb[0].mxu0 }
  0xef   : > { %265 = vadd.xlane.f32.xlu0 %v258_v4  ;;  %v389_v5 = vpop.f32.mrb[1].mxu0  ;;  %v271_v8 = vmul.f32 %v258_v4, %v258_v4 }
  0xf0   : > { %v261_v6 = vpop.f32.mrb[2].mxu0 }
  0xf1   : > { %v390_v7 = vpop.f32.mrb[3].mxu0 }
  0xf3   : > { %272 = vadd.xlane.f32.xlu0 %v271_v8 }
 0x17c   : > { %v266_v10 = vpop.xlane.xlu0 %265 }
 0x17d   : > { %v267_v11 = vadd.f32 %v266_v10, %v264_v9 }
 0x17f   : > { %269 = vst.msk [vmem:[%s519_s2] sm:$0xff] %vm268_vm3, %v267_v11 }
 0x180   : > { %v273_v13 = vpop.xlane.xlu0 %272 }
 0x181   : > { %v274_v14 = vadd.f32 %v273_v13, %v270_v12 }
 0x183   : > { %275 = vst.msk [vmem:[%s520_s3] sm:$0xff] %vm268_vm3, %v274_v14 }
 0x184 PF: > { %s14_s14 = sadd.s32 1, %s441_s14   ;;  %s521_s12 = smov %s437_s13 }
 0x185   : > { %p11_p6 = scmp.ge.s32.totalorder %s14_s14, 10   ;;  %s522_s13 = smov %s524_s15 }
 0x187   :  { %13 = sbr.rel (!%p11_p6) target bundleno = 2 (0x2), region = 74 }

// kernel: downsampling_layer.3
= control target key start
LH: loop header
LB: loop body
LE: loop exit
PB: predicated region body
PF: predicated region fallthrough
CT: control target
= control target key end

     0   :  { %s496_s15 = smov 0   ;;  %s498_s16 = smov 0   ;;  %s541_s0 = inlined_call_operand.vmem [shape: bf16[8,16], index: 0, kind: input, shape index: {}]   ;;  %s542_s1 = inlined_call_operand.vmem [shape: f32[8,1], index: 1, kind: input, shape index: {}]   ;;  %s543_s2 = inlined_call_operand.vmem [shape: f32[8,1], index: 2, kind: input, shape index: {}]   ;;  %s544_s3 = inlined_call_operand.vmem [shape: bf16[8,16,128], index: 3, kind: input, shape index: {}]   ;;  %s545_s4 = inlined_call_operand.vmem [shape: f32[8,8,128], index: 4, kind: output, shape index: {}]  }
   0x1   :  { %s500_s17 = smov 0  }
   0x2 LB: > { %s23_s18 = sadd.s32 1, %s461_s16  ;;  %p394_p0 = scmp.ge.s32.totalorder %s465_s17, 1  ;;  %s465_s17 = sphi %s500_s17, %s14_s17   ;;  %s461_s16 = sphi %s498_s16, %s547_s16   ;;  %s457_s15 = sphi %s496_s15, %s546_s15  }
   0x3   : > { %p24_p1 = scmp.ge.s32.totalorder %s23_s18, 8  ;;  %p181_p2 = scmp.lt.s32.totalorder %s465_s17, 9 }
   0x5   : > { %s549_s18 = smov (%p24_p1, %s23_s18), 0  ;;  %p182_p3 = pnand %p394_p0, %p181_p2 }
   0x6   : > { %p212_p4 = scmp.lt.s32.totalorder (!%p182_p3), %s457_s15, 7  ;;  %p398_p5 = scmp.ne.s32.totalorder (!%p182_p3), %s457_s15, 0 }
   0x7   : > { %185 = sbr.rel (%p182_p3) target bundleno = 248 (0xf8), region = 36 }
   0xe   : > { %s213_s19 = scalar_select %p212_p4, %s457_s15, 7 }
   0xf   : > { %231 = sbr.rel (%p398_p5) target bundleno = 22 (0x16), region = 40  ;;  %v467_v0 = vmov (!%p398_p5), 0.0  }
  0x10   : > { %s404_s20 = sshll.u32 %s213_s19, 3  ;;  %232 = vst [vmem:[#allocation2] sm:$0xff] (!%p398_p5), %v467_v0  ;;  %233 = vst [vmem:[#allocation3] sm:$0xff] (!%p398_p5), %v467_v0 }
  0x11   : > { %s219_s23 = scalar_lea.vmem %s544_s3, %s404_s20  ;;  %s520_s26 = scalar_lea.vmem %s545_s4, %s404_s20 }
  0x16 PF: > { %v442_v1 = vld [vmem:[%s219_s23] sm:$0xff]   ;;  %v468_v2 = vmov 0.0   ;;  %vm469_vm0 = vmmov 0   ;;  %vm243_vm1 = vcmask 130048   ;;  %v470_v5 = vmov 0  }
  0x17   : > { %407 = vmatprep.subr.bf16.mxu0 %v468_v2  ;;  %v287_v3 = vld [vmem:[%s542_s1] sm:$0xff]  ;;  %409 = vmatprep.mubr.msk.bf16.mxu0 %vm469_vm0, %v468_v2  ;;  %v303_v8 = vld [vmem:[#allocation3] sm:$0xff] }
  0x18   : > { %408 = vmatpush3.bf16.msra.mxu0 %v442_v1  ;;  %v234_v4 = vld [vmem:[%s541_s0] sm:$0xf]  ;;  %441 = vset.pattern.permute.xlu0 %v470_v5  ;;  %v304_v11 = vsub.f32 1.0, %v303_v8 }
  0x19   : > { %290 = vperm.xlu0 %441, %v287_v3   ;;  %v294_v6 = vld [vmem:[%s543_s2] sm:$0xff] }
  0x1a   : > { %v301_v7 = vld [vmem:[#allocation2] sm:$0xff] }
  0x1b   : > { %410 = vmatmul.mubr.msk.bf16.vlgmr.msra.gmra.mrb[0].mxu0 %vm243_vm1, %v234_v4  ;;  %v302_v10 = vmul.f32 0.5, %v301_v7 }
  0x1d   : > { %297 = vperm.xlu0 %441, %v294_v6   ;;  %v305_v14 = vmul.f32 %v304_v11, %v302_v10 }
  0x98   : > { %v291_v9 = vpop.permute.xlu0 %290 }
  0x9c   : > { %v298_v16 = vpop.permute.xlu0 %297 }
  0xee   : > { %v281_v12 = vpop.f32.mrb[0].mxu0 }
  0xef   : > { %v293_v13 = vmul.f32 %v291_v9, %v281_v12  ;;  %v411_v15 = vpop.f32.mrb[1].mxu0 }
  0xf0   : > { %v284_v17 = vpop.f32.mrb[2].mxu0 }
  0xf1   : > { %v300_v18 = vadd.f32 %v298_v16, %v293_v13  ;;  %v412_v19 = vpop.f32.mrb[3].mxu0 }
  0xf3   : > { %v306_v20 = vadd.f32 %v305_v14, %v300_v18 }
  0xf5   : > { %vm307_vm2 = vcmp.gt.f32.partialorder %v306_v20, 0.5  ;;  %310 = vst [vmem:[#allocation2] sm:$0xff] %v306_v20 }
  0xf6   : > { %v401_v21 = vsel %vm307_vm2, 1.0, %v468_v2 }
  0xf7   : > { %311 = vst [vmem:[#allocation3] sm:$0xff] %v401_v21  ;;  %312 = vst [vmem:[%s520_s26] sm:$0xff] %v401_v21 }
  0xf8 PF: > { %s14_s17 = sadd.s32 1, %s465_s17   ;;  %s546_s15 = smov %s461_s16 }
  0xf9   : > { %p11_p6 = scmp.ge.s32.totalorder %s14_s17, 10   ;;  %s547_s16 = smov %s549_s18 }
  0xfb   :  { %13 = sbr.rel (!%p11_p6) target bundleno = 2 (0x2), region = 70 }

</bundles_post_ra>
